<compile_context>
chip_gen: v5e
topology: v5e:2x2
jax: 0.10.0
libtpu: 0.0.40
codegen_flags: <defaults>
</compile_context>

<pallas_src>
import functools

import jax
import jax.numpy as jnp
from jax.experimental import pallas as pl
from jax.experimental.pallas import tpu as pltpu


# ----------------------------------------------------------------------------
# Fused Pallas kernel: embedding + encoder(e_layers) + head in one call
# ----------------------------------------------------------------------------
def _make_fused_kernel(n_layers):
    def kernel(p_ref, we_ref, be_ref, bd0_ref, m1_ref, s_ref, bc_ref,
               hw_ref, hb_ref, o_ref):
        # p_ref : (B*V, P*Kp)   patches in head layout
        # we_ref: (P*Kp, P*E)   kron(I_P, emb_w)
        # be_ref: (1, P*E)
        # bd0   : (L, P*E, P*E) kron(I_P, I + W0 - W2)
        # m1    : (L, P*E, P*E) kron(ones(P,P), -(1/N)*(W1 - 2*W2))
        # s_ref : (B*V, B*V)    per-batch row-sum operator kron(I_B, ones(V,V))
        # bc_ref: (L, 1, P*E)
        # hw_ref: (P*E, O), hb_ref: (1, O), o_ref: (B*V, O)
        x = (jnp.dot(p_ref[...], we_ref[...],
                     preferred_element_type=jnp.float32) + be_ref[...])
        for l in range(n_layers):        # static unroll (e_layers is tiny)
            x = (jnp.dot(x, bd0_ref[l], preferred_element_type=jnp.float32)
                 + jnp.dot(jnp.dot(s_ref[...], x,
                                   preferred_element_type=jnp.float32),
                           m1_ref[l], preferred_element_type=jnp.float32)
                 + bc_ref[l])
        y = (jnp.dot(x, hw_ref[...],
                     preferred_element_type=jnp.float32) + hb_ref[...])
        o_ref[...] = y.astype(o_ref.dtype)

    return kernel


def pallas_fused_forward(patches_h, fused, s_mat):
    M = patches_h.shape[0]
    O = fused["head_w"].shape[1]
    n_layers = fused["bd0"].shape[0]
    vmem = pl.BlockSpec(memory_space=pltpu.MemorySpace.VMEM)
    return pl.pallas_call(
        _make_fused_kernel(n_layers),
        out_shape=jax.ShapeDtypeStruct((M, O), patches_h.dtype),
        in_specs=[vmem] * 9,
        out_specs=vmem,
    )(patches_h, fused["w_emb_bd"], fused["b_emb"], fused["bd0"], fused["m1"],
      s_mat, fused["b_cheb"], fused["head_w"], fused["head_b"])


# ----------------------------------------------------------------------------
# Plain-JAX glue: patchify, host-side weight folding, config, params
# ----------------------------------------------------------------------------
def patchify(x, patch_len, stride, padding):
    """x: (B, C, T, V) -> (B, V, P, C*patch_len), replication pad on T."""
    B, C, T, V = x.shape
    xt = jnp.transpose(x, (0, 3, 1, 2))                       # (B, V, C, T)
    if padding > 0:
        pad = jnp.repeat(xt[..., -1:], padding, axis=-1)      # replication pad
        xt = jnp.concatenate([xt, pad], axis=-1)              # (B, V, C, T+pad)
    patch_num = (T + padding - patch_len) // stride + 1
    # static strided slices instead of a fancy-index gather
    slabs = [xt[..., p * stride: p * stride + patch_len] for p in range(patch_num)]
    patches = jnp.stack(slabs, axis=3)                        # (B, V, C, P, pl)
    patches = jnp.transpose(patches, (0, 1, 3, 2, 4))         # (B, V, P, C, pl)
    return patches.reshape(B, V, patch_num, C * patch_len), patch_num


class PureGraphConfig:
    task_name = "rec"
    e_layers = 2
    seg_len = 16
    for_len = 16
    in_features = 3
    out_features = 3
    embedding_channels = 32
    d_ff = 64
    dropout = 0.1
    fusion = "concat"
    pose_num = 4
    patch_len = 8
    stride = 4
    padding = 4


def init_params(cfg, key):
    C, E = cfg.in_features, cfg.embedding_channels
    patch_num = (cfg.seg_len + cfg.padding - cfg.patch_len) // cfg.stride + 1
    k = jax.random.split(key, 6)
    s = 0.05
    params = {
        "emb_w": jax.random.normal(k[0], (C * cfg.patch_len, E), jnp.float32) * s,
        "emb_b": jax.random.normal(k[1], (E,), jnp.float32) * s,
        "cheb_w": [
            jax.random.normal(jax.random.fold_in(k[2], i), (3, E, E), jnp.float32) * s
            for i in range(cfg.e_layers)
        ],
        "cheb_b": [
            jax.random.normal(jax.random.fold_in(k[3], i), (E,), jnp.float32) * s
            for i in range(cfg.e_layers)
        ],
        "head_w": jax.random.normal(
            k[4], (E * patch_num, cfg.out_features * cfg.seg_len), jnp.float32) * s,
        "head_b": jax.random.normal(
            k[5], (cfg.out_features * cfg.seg_len,), jnp.float32) * s,
    }
    return params, patch_num


def prepare_fused_weights(params, patch_num, pose_num):
    """One-time host-side weight folding into the lane-dense head layout."""
    E = params["emb_w"].shape[1]
    P = patch_num
    N = P * pose_num
    eye_p = jnp.eye(P, dtype=jnp.float32)
    ones_p = jnp.ones((P, P), dtype=jnp.float32)
    eye_e = jnp.eye(E, dtype=jnp.float32)
    inv = -1.0 / float(N)                       # L~ = -ones(N,N)/N (adj = ones)
    bd0, m1, bcheb = [], [], []
    for w, b in zip(params["cheb_w"], params["cheb_b"]):
        a0 = eye_e + w[0] - w[2]                # folds T2's "-T0" and residual
        a1 = w[1] - 2.0 * w[2]                  # folds "2*L~@T1" (= -2*T1)
        bd0.append(jnp.kron(eye_p, a0))
        m1.append(jnp.kron(ones_p, inv * a1))
        bcheb.append(jnp.tile(b, P))
    return {
        "w_emb_bd": jnp.kron(eye_p, params["emb_w"]),       # (P*Kp, P*E)
        "b_emb": jnp.tile(params["emb_b"], P)[None, :],     # (1, P*E)
        "bd0": jnp.stack(bd0),                              # (L, P*E, P*E)
        "m1": jnp.stack(m1),                                # (L, P*E, P*E)
        "b_cheb": jnp.stack(bcheb)[:, None, :],             # (L, 1, P*E)
        "head_w": params["head_w"],                         # (P*E, O)
        "head_b": params["head_b"][None, :],                # (1, O)
    }


@functools.partial(jax.jit, static_argnames=("patch_len", "stride", "padding",
                                             "pose_num", "seg_len", "out_features"))
def pure_graph_forward(x, fused, *, patch_len, stride, padding, pose_num,
                       seg_len, out_features):
    """Forward pass (task_name == 'rec'). x: (B, C, T, V) -> (B, out, T, V)."""
    B, C, T, V = x.shape
    patches, patch_num = patchify(x, patch_len, stride, padding)  # (B,V,P,Kp)
    Kp = patches.shape[-1]
    patches_h = patches.reshape(B * V, patch_num * Kp)            # head layout
    # per-batch row-sum operator (constant-folded by XLA at compile time)
    s_mat = jnp.kron(jnp.eye(B, dtype=x.dtype), jnp.ones((V, V), x.dtype))
    y2d = pallas_fused_forward(patches_h, fused, s_mat)           # (B*V, O)
    y = y2d.reshape(B, V, seg_len, out_features)
    return jnp.transpose(y, (0, 3, 2, 1))                         # (B, out, T, V)


def reference_forward(x, params, cfg):
    """Pure-JAX reference of the un-folded math (explicit L~ matmuls)."""
    B, C, T, V = x.shape
    patches, patch_num = patchify(x, cfg.patch_len, cfg.stride, cfg.padding)
    E = params["emb_w"].shape[1]
    N = patch_num * V
    x_emb = patches.reshape(B, N, -1) @ params["emb_w"] + params["emb_b"]
    L = -jnp.ones((N, N), jnp.float32) / float(N)
    x_enc = x_emb
    for w, b in zip(params["cheb_w"], params["cheb_b"]):
        t0 = x_enc
        t1 = jnp.einsum("nm,bme->bne", L, t0)
        t2 = 2.0 * jnp.einsum("nm,bme->bne", L, t1) - t0
        y = t0 @ w[0] + t1 @ w[1] + t2 @ w[2] + b
        x_enc = y + x_enc
    x_h = x_enc.reshape(B, V, patch_num * E)
    y = x_h @ params["head_w"] + params["head_b"]
    y = y.reshape(B, V, cfg.seg_len, cfg.out_features)
    return jnp.transpose(y, (0, 3, 2, 1))


if __name__ == "__main__":
    cfg = PureGraphConfig()
    key = jax.random.PRNGKey(0)
    kx, kp = jax.random.split(key)
    # input: (B, C, T, V) = (2, 3, 16, 4)
    x = jax.random.normal(kx, (2, cfg.in_features, cfg.seg_len, cfg.pose_num),
                          jnp.float32)
    params, patch_num = init_params(cfg, kp)
    fused = prepare_fused_weights(params, patch_num, cfg.pose_num)  # host, once

    out = pure_graph_forward(
        x, fused,
        patch_len=cfg.patch_len, stride=cfg.stride, padding=cfg.padding,
        pose_num=cfg.pose_num, seg_len=cfg.seg_len, out_features=cfg.out_features,
    )
    out = jax.block_until_ready(out)
    assert out.shape == (2, cfg.out_features, cfg.seg_len, cfg.pose_num), out.shape

    ref = jax.block_until_ready(reference_forward(x, params, cfg))
    assert jnp.allclose(out, ref, atol=1e-4, rtol=1e-4), float(
        jnp.max(jnp.abs(out - ref)))
    print("KERNEL_OK")
</pallas_src>

<mosaic_0001>
module attributes {stable_mosaic.version = 11 : i64} {
  func.func @kernel(%arg0: memref<8x96xf32, #tpu.memory_space<vmem>>, %arg1: memref<96x128xf32, #tpu.memory_space<vmem>>, %arg2: memref<1x128xf32, #tpu.memory_space<vmem>>, %arg3: memref<2x128x128xf32, #tpu.memory_space<vmem>>, %arg4: memref<2x128x128xf32, #tpu.memory_space<vmem>>, %arg5: memref<8x8xf32, #tpu.memory_space<vmem>>, %arg6: memref<2x1x128xf32, #tpu.memory_space<vmem>>, %arg7: memref<128x48xf32, #tpu.memory_space<vmem>>, %arg8: memref<1x48xf32, #tpu.memory_space<vmem>>, %arg9: memref<8x48xf32, #tpu.memory_space<vmem>>) attributes {dimension_semantics = [], scalar_prefetch = 0 : i64, scratch_operands = 0 : i64, tpu.core_type = #tpu.core_type<tc>} {
    %c0 = arith.constant 0 : index
    %c0_0 = arith.constant 0 : index
    %0 = vector.load %arg0[%c0, %c0_0] : memref<8x96xf32, #tpu.memory_space<vmem>>, vector<8x96xf32>
    %c0_1 = arith.constant 0 : index
    %c0_2 = arith.constant 0 : index
    %1 = vector.load %arg1[%c0_1, %c0_2] : memref<96x128xf32, #tpu.memory_space<vmem>>, vector<96x128xf32>
    %cst = arith.constant dense<0.000000e+00> : vector<8x128xf32>
    %2 = tpu.matmul %0, %1, %cst {dimension_numbers = #tpu.dot_dimension_numbers<[1], [0], [0], [1], [0, 0, 1, 1], [], []>} : vector<8x96xf32>, vector<96x128xf32>, vector<8x128xf32> -> vector<8x128xf32>
    %c0_3 = arith.constant 0 : index
    %c0_4 = arith.constant 0 : index
    %3 = vector.load %arg2[%c0_3, %c0_4] : memref<1x128xf32, #tpu.memory_space<vmem>>, vector<1x128xf32>
    %4 = vector.broadcast %3 : vector<1x128xf32> to vector<8x128xf32>
    %5 = arith.addf %2, %4 : vector<8x128xf32>
    %c0_5 = arith.constant 0 : index
    %c0_6 = arith.constant 0 : index
    %c0_7 = arith.constant 0 : index
    %6 = vector.load %arg3[%c0_5, %c0_6, %c0_7] : memref<2x128x128xf32, #tpu.memory_space<vmem>>, vector<1x128x128xf32>
    %7 = vector.shape_cast %6 : vector<1x128x128xf32> to vector<128x128xf32>
    %cst_8 = arith.constant dense<0.000000e+00> : vector<8x128xf32>
    %8 = tpu.matmul %5, %7, %cst_8 {dimension_numbers = #tpu.dot_dimension_numbers<[1], [0], [0], [1], [0, 0, 1, 1], [], []>} : vector<8x128xf32>, vector<128x128xf32>, vector<8x128xf32> -> vector<8x128xf32>
    %c0_9 = arith.constant 0 : index
    %c0_10 = arith.constant 0 : index
    %9 = vector.load %arg5[%c0_9, %c0_10] : memref<8x8xf32, #tpu.memory_space<vmem>>, vector<8x8xf32>
    %cst_11 = arith.constant dense<0.000000e+00> : vector<8x128xf32>
    %10 = tpu.matmul %9, %5, %cst_11 {dimension_numbers = #tpu.dot_dimension_numbers<[1], [0], [0], [1], [0, 0, 1, 1], [], []>} : vector<8x8xf32>, vector<8x128xf32>, vector<8x128xf32> -> vector<8x128xf32>
    %c0_12 = arith.constant 0 : index
    %c0_13 = arith.constant 0 : index
    %c0_14 = arith.constant 0 : index
    %11 = vector.load %arg4[%c0_12, %c0_13, %c0_14] : memref<2x128x128xf32, #tpu.memory_space<vmem>>, vector<1x128x128xf32>
    %12 = vector.shape_cast %11 : vector<1x128x128xf32> to vector<128x128xf32>
    %cst_15 = arith.constant dense<0.000000e+00> : vector<8x128xf32>
    %13 = tpu.matmul %10, %12, %cst_15 {dimension_numbers = #tpu.dot_dimension_numbers<[1], [0], [0], [1], [0, 0, 1, 1], [], []>} : vector<8x128xf32>, vector<128x128xf32>, vector<8x128xf32> -> vector<8x128xf32>
    %14 = arith.addf %8, %13 : vector<8x128xf32>
    %c0_16 = arith.constant 0 : index
    %c0_17 = arith.constant 0 : index
    %c0_18 = arith.constant 0 : index
    %15 = vector.load %arg6[%c0_16, %c0_17, %c0_18] : memref<2x1x128xf32, #tpu.memory_space<vmem>>, vector<1x1x128xf32>
    %16 = vector.shape_cast %15 : vector<1x1x128xf32> to vector<1x128xf32>
    %17 = vector.broadcast %16 : vector<1x128xf32> to vector<8x128xf32>
    %18 = arith.addf %14, %17 : vector<8x128xf32>
    %c1 = arith.constant 1 : index
    %c0_19 = arith.constant 0 : index
    %c0_20 = arith.constant 0 : index
    %19 = vector.load %arg3[%c1, %c0_19, %c0_20] : memref<2x128x128xf32, #tpu.memory_space<vmem>>, vector<1x128x128xf32>
    %20 = vector.shape_cast %19 : vector<1x128x128xf32> to vector<128x128xf32>
    %cst_21 = arith.constant dense<0.000000e+00> : vector<8x128xf32>
    %21 = tpu.matmul %18, %20, %cst_21 {dimension_numbers = #tpu.dot_dimension_numbers<[1], [0], [0], [1], [0, 0, 1, 1], [], []>} : vector<8x128xf32>, vector<128x128xf32>, vector<8x128xf32> -> vector<8x128xf32>
    %c0_22 = arith.constant 0 : index
    %c0_23 = arith.constant 0 : index
    %22 = vector.load %arg5[%c0_22, %c0_23] : memref<8x8xf32, #tpu.memory_space<vmem>>, vector<8x8xf32>
    %cst_24 = arith.constant dense<0.000000e+00> : vector<8x128xf32>
    %23 = tpu.matmul %22, %18, %cst_24 {dimension_numbers = #tpu.dot_dimension_numbers<[1], [0], [0], [1], [0, 0, 1, 1], [], []>} : vector<8x8xf32>, vector<8x128xf32>, vector<8x128xf32> -> vector<8x128xf32>
    %c1_25 = arith.constant 1 : index
    %c0_26 = arith.constant 0 : index
    %c0_27 = arith.constant 0 : index
    %24 = vector.load %arg4[%c1_25, %c0_26, %c0_27] : memref<2x128x128xf32, #tpu.memory_space<vmem>>, vector<1x128x128xf32>
    %25 = vector.shape_cast %24 : vector<1x128x128xf32> to vector<128x128xf32>
    %cst_28 = arith.constant dense<0.000000e+00> : vector<8x128xf32>
    %26 = tpu.matmul %23, %25, %cst_28 {dimension_numbers = #tpu.dot_dimension_numbers<[1], [0], [0], [1], [0, 0, 1, 1], [], []>} : vector<8x128xf32>, vector<128x128xf32>, vector<8x128xf32> -> vector<8x128xf32>
    %27 = arith.addf %21, %26 : vector<8x128xf32>
    %c1_29 = arith.constant 1 : index
    %c0_30 = arith.constant 0 : index
    %c0_31 = arith.constant 0 : index
    %28 = vector.load %arg6[%c1_29, %c0_30, %c0_31] : memref<2x1x128xf32, #tpu.memory_space<vmem>>, vector<1x1x128xf32>
    %29 = vector.shape_cast %28 : vector<1x1x128xf32> to vector<1x128xf32>
    %30 = vector.broadcast %29 : vector<1x128xf32> to vector<8x128xf32>
    %31 = arith.addf %27, %30 : vector<8x128xf32>
    %c0_32 = arith.constant 0 : index
    %c0_33 = arith.constant 0 : index
    %32 = vector.load %arg7[%c0_32, %c0_33] : memref<128x48xf32, #tpu.memory_space<vmem>>, vector<128x48xf32>
    %cst_34 = arith.constant dense<0.000000e+00> : vector<8x48xf32>
    %33 = tpu.matmul %31, %32, %cst_34 {dimension_numbers = #tpu.dot_dimension_numbers<[1], [0], [0], [1], [0, 0, 1, 1], [], []>} : vector<8x128xf32>, vector<128x48xf32>, vector<8x48xf32> -> vector<8x48xf32>
    %c0_35 = arith.constant 0 : index
    %c0_36 = arith.constant 0 : index
    %34 = vector.load %arg8[%c0_35, %c0_36] : memref<1x48xf32, #tpu.memory_space<vmem>>, vector<1x48xf32>
    %35 = vector.broadcast %34 : vector<1x48xf32> to vector<8x48xf32>
    %36 = arith.addf %33, %35 : vector<8x48xf32>
    %c0_37 = arith.constant 0 : index
    %c0_38 = arith.constant 0 : index
    %37 = vector.load %arg9[%c0_37, %c0_38] : memref<8x48xf32, #tpu.memory_space<vmem>>, vector<8x48xf32>
    tpu.vector_store %arg9[%c0_37, %c0_38], %36 {strides = array<i32>} : memref<8x48xf32, #tpu.memory_space<vmem>>, vector<8x48xf32>,
    return
  }
}

</mosaic_0001>

<bundles_post_ra>
// kernel: pure_graph_forward.1
= control target key start
LH: loop header
LB: loop body
LE: loop exit
PB: predicated region body
PF: predicated region fallthrough
CT: control target
= control target key end

     0   :  { %vm49_vm0 = vcmask 785408   ;;  %vm90_vm1 = vcmask 64512   ;;  %vm315_vm2 = vcmask 392192   ;;  %s710_s1 = inlined_call_operand.vmem [shape: f32[96,128], index: 1, kind: input, shape index: {}]   ;;  %s711_s3 = inlined_call_operand.vmem [shape: f32[2,128,128], index: 3, kind: input, shape index: {}]   ;;  %s712_s2 = inlined_call_operand.vmem [shape: f32[1,128], index: 2, kind: input, shape index: {}]   ;;  %s713_s0 = inlined_call_operand.vmem [shape: f32[8,96], index: 0, kind: input, shape index: {}]   ;;  %s714_s4 = inlined_call_operand.vmem [shape: f32[2,128,128], index: 4, kind: input, shape index: {}]   ;;  %s715_s5 = inlined_call_operand.vmem [shape: f32[8,8], index: 5, kind: input, shape index: {}]   ;;  %s716_s6 = inlined_call_operand.vmem [shape: f32[2,1,128], index: 6, kind: input, shape index: {}]   ;;  %s717_s7 = inlined_call_operand.vmem [shape: f32[128,48], index: 7, kind: input, shape index: {}]   ;;  %s718_s8 = inlined_call_operand.vmem [shape: f32[1,48], index: 8, kind: input, shape index: {}]   ;;  %s719_s9 = inlined_call_operand.vmem [shape: f32[8,48], index: 9, kind: output, shape index: {}]  }
   0x1   :  { %v44_v0 = vld [vmem:[%s710_s1 + $0x58] sm:$0xff]  ;;  %v43_v1 = vld [vmem:[%s710_s1 + $0x50] sm:$0xff]  ;;  %v42_v2 = vld [vmem:[%s710_s1 + $0x48] sm:$0xff] }
   0x2   :  { %57 = vmatpush.msra.mxu0 %v44_v0  ;;  %v41_v3 = vld [vmem:[%s710_s1 + $0x40] sm:$0xff]  ;;  %v88_v4 = vld [vmem:[%s711_s3 + $0x78] sm:$0xff]  ;;  %v87_v5 = vld [vmem:[%s711_s3 + $0x70] sm:$0xff] }
   0x3   :  { %150 = vmatpush.msra.mxu3 %v88_v4  ;;  %v40_v6 = vld [vmem:[%s710_s1 + $0x38] sm:$0xff]  ;;  %v86_v7 = vld [vmem:[%s711_s3 + $0x68] sm:$0xff]  ;;  %v39_v8 = vld [vmem:[%s710_s1 + $0x30] sm:$0xff] }
   0x4   :  { %58 = vmatpush.msra.mxu0 %v43_v1  ;;  %v85_v9 = vld [vmem:[%s711_s3 + $0x60] sm:$0xff]  ;;  %v38_v10 = vld [vmem:[%s710_s1 + $0x28] sm:$0xff]  ;;  %v84_v11 = vld [vmem:[%s711_s3 + $0x58] sm:$0xff] }
   0x5   :  { %151 = vmatpush.msra.mxu3 %v87_v5  ;;  %v37_v12 = vld [vmem:[%s710_s1 + $0x20] sm:$0xff]  ;;  %v83_v13 = vld [vmem:[%s711_s3 + $0x50] sm:$0xff]  ;;  %v36_v14 = vld [vmem:[%s710_s1 + $0x18] sm:$0xff] }
   0x6   :  { %59 = vmatpush.msra.mxu0 %v42_v2  ;;  %v82_v15 = vld [vmem:[%s711_s3 + $0x48] sm:$0xff]  ;;  %v35_v16 = vld [vmem:[%s710_s1 + $0x10] sm:$0xff]  ;;  %v81_v17 = vld [vmem:[%s711_s3 + $0x40] sm:$0xff] }
   0x7   :  { %152 = vmatpush.msra.mxu3 %v86_v7  ;;  %v34_v18 = vld [vmem:[%s710_s1 + $0x8] sm:$0xff]  ;;  %v80_v19 = vld [vmem:[%s711_s3 + $0x38] sm:$0xff]  ;;  %v33_v20 = vld [vmem:[%s710_s1] sm:$0xff] }
   0x8   :  { %60 = vmatpush.msra.mxu0 %v41_v3  ;;  %v79_v21 = vld [vmem:[%s711_s3 + $0x30] sm:$0xff]  ;;  %v32_v22 = vld [vmem:[%s713_s0] sm:$0xff]  ;;  %v78_v23 = vld [vmem:[%s711_s3 + $0x28] sm:$0xff] }
   0x9   :  { %153 = vmatpush.msra.mxu3 %v85_v9  ;;  %v77_v24 = vld [vmem:[%s711_s3 + $0x20] sm:$0xff]  ;;  %v76_v25 = vld [vmem:[%s711_s3 + $0x18] sm:$0xff]  ;;  %v75_v26 = vld [vmem:[%s711_s3 + $0x10] sm:$0xff] }
   0xa   :  { %61 = vmatpush.msra.mxu0 %v40_v6  ;;  %v74_v27 = vld [vmem:[%s711_s3 + $0x8] sm:$0xff]  ;;  %v73_v28 = vld [vmem:[%s711_s3] sm:$0xff]  ;;  %v129_v29 = vld [vmem:[%s714_s4 + $0x78] sm:$0xff] }
   0xb   :  { %154 = vmatpush.msra.mxu3 %v84_v11  ;;  %v128_v30 = vld [vmem:[%s714_s4 + $0x70] sm:$0xff]  ;;  %130 = vmatpush.msra.mxu2 %v129_v29  ;;  %v127_v31 = vld [vmem:[%s714_s4 + $0x68] sm:$0xff]  ;;  %v126_v32 = vld [vmem:[%s714_s4 + $0x60] sm:$0xff] }
   0xc   :  { %62 = vmatpush.msra.mxu0 %v39_v8  ;;  %v125_v33 = vld [vmem:[%s714_s4 + $0x58] sm:$0xff]  ;;  %v124_v34 = vld [vmem:[%s714_s4 + $0x50] sm:$0xff]  ;;  %v123_v35 = vld [vmem:[%s714_s4 + $0x48] sm:$0xff] }
   0xd   :  { %155 = vmatpush.msra.mxu3 %v83_v13  ;;  %131 = vmatpush.msra.mxu2 %v128_v30  ;;  %v122_v36 = vld [vmem:[%s714_s4 + $0x40] sm:$0xff]  ;;  %v121_v37 = vld [vmem:[%s714_s4 + $0x38] sm:$0xff]  ;;  %v120_v38 = vld [vmem:[%s714_s4 + $0x30] sm:$0xff] }
   0xe   :  { %63 = vmatpush.msra.mxu0 %v38_v10  ;;  %v119_v39 = vld [vmem:[%s714_s4 + $0x28] sm:$0xff]  ;;  %v118_v40 = vld [vmem:[%s714_s4 + $0x20] sm:$0xff]  ;;  %v117_v41 = vld [vmem:[%s714_s4 + $0x18] sm:$0xff] }
   0xf   :  { %156 = vmatpush.msra.mxu3 %v82_v15  ;;  %132 = vmatpush.msra.mxu2 %v127_v31  ;;  %v116_v42 = vld [vmem:[%s714_s4 + $0x10] sm:$0xff]  ;;  %v357_v43 = vld [vmem:[%s712_s2] ss:$0 sm:$0xff]  ;;  %v115_v44 = vld [vmem:[%s714_s4 + $0x8] sm:$0xff] }
  0x10   :  { %64 = vmatpush.msra.mxu0 %v37_v12  ;;  %v89_v47 = vld [vmem:[%s715_s5] sm:$0xff]  ;;  %v338_v49 = vld [vmem:[%s711_s3 + $0xf8] sm:$0xff]  ;;  %v337_v50 = vld [vmem:[%s711_s3 + $0xf0] sm:$0xff] }
  0x11   :  { %157 = vmatpush.msra.mxu3 %v81_v17  ;;  %133 = vmatpush.msra.mxu2 %v126_v32  ;;  %v114_v48 = vld [vmem:[%s714_s4] sm:$0xff]  ;;  %v336_v51 = vld [vmem:[%s711_s3 + $0xe8] sm:$0xff]  ;;  %v334_v53 = vld [vmem:[%s711_s3 + $0xd8] sm:$0xff] }
  0x12   :  { %65 = vmatpush.msra.mxu0 %v36_v14  ;;  %v335_v52 = vld [vmem:[%s711_s3 + $0xe0] sm:$0xff]  ;;  %v333_v54 = vld [vmem:[%s711_s3 + $0xd0] sm:$0xff]  ;;  %v332_v55 = vld [vmem:[%s711_s3 + $0xc8] sm:$0xff] }
  0x13   :  { %158 = vmatpush.msra.mxu3 %v80_v19  ;;  %134 = vmatpush.msra.mxu2 %v125_v33  ;;  %v331_v56 = vld [vmem:[%s711_s3 + $0xc0] sm:$0xff]  ;;  %v330_v57 = vld [vmem:[%s711_s3 + $0xb8] sm:$0xff]  ;;  %v329_v58 = vld [vmem:[%s711_s3 + $0xb0] sm:$0xff] }
  0x14   :  { %66 = vmatpush.msra.mxu0 %v35_v16  ;;  %v328_v59 = vld [vmem:[%s711_s3 + $0xa8] sm:$0xff]  ;;  %v327_v60 = vld [vmem:[%s711_s3 + $0xa0] sm:$0xff]  ;;  %v326_v61 = vld [vmem:[%s711_s3 + $0x98] sm:$0xff] }
  0x15   :  { %159 = vmatpush.msra.mxu3 %v79_v21  ;;  %135 = vmatpush.msra.mxu2 %v124_v34  ;;  %v325_v63 = vld [vmem:[%s711_s3 + $0x90] sm:$0xff]  ;;  %v324_v0 = vld [vmem:[%s711_s3 + $0x88] sm:$0xff]  ;;  %v323_v1 = vld [vmem:[%s711_s3 + $0x80] sm:$0xff] }
  0x16   :  { %67 = vmatpush.msra.mxu0 %v34_v18  ;;  %v358_v2 = vld [vmem:[%s716_s6] ss:$0 sm:$0xff]  ;;  %v355_v7 = vld [vmem:[%s714_s4 + $0xf8] sm:$0xff]  ;;  %v354_v8 = vld [vmem:[%s714_s4 + $0xf0] sm:$0xff] }
  0x17   :  { %160 = vmatpush.msra.mxu3 %v78_v23  ;;  %136 = vmatpush.msra.mxu2 %v123_v35  ;;  %v353_v9 = vld [vmem:[%s714_s4 + $0xe8] sm:$0xff]  ;;  %v352_v10 = vld [vmem:[%s714_s4 + $0xe0] sm:$0xff]  ;;  %v351_v11 = vld [vmem:[%s714_s4 + $0xd8] sm:$0xff] }
  0x18   :  { %68 = vmatpush.msra.mxu0 %v33_v20  ;;  %v350_v12 = vld [vmem:[%s714_s4 + $0xd0] sm:$0xff]  ;;  %v349_v13 = vld [vmem:[%s714_s4 + $0xc8] sm:$0xff]  ;;  %v348_v14 = vld [vmem:[%s714_s4 + $0xc0] sm:$0xff] }
  0x19   :  { %321 = vmatmul.msk.f32.vlgmr.msra.gmra.mxu0 %vm49_vm0, %v32_v22  ;;  %161 = vmatpush.msra.mxu3 %v77_v24  ;;  %v347_v15 = vld [vmem:[%s714_s4 + $0xb8] sm:$0xff]  ;;  %v346_v16 = vld [vmem:[%s714_s4 + $0xb0] sm:$0xff]  ;;  %v345_v17 = vld [vmem:[%s714_s4 + $0xa8] sm:$0xff] }
  0x1a   :  { %137 = vmatpush.msra.mxu2 %v122_v36  ;;  %249 = vmatpush.msrb.mxu0 %v338_v49  ;;  %v344_v18 = vld [vmem:[%s714_s4 + $0xa0] sm:$0xff]  ;;  %v343_v19 = vld [vmem:[%s714_s4 + $0x98] sm:$0xff]  ;;  %v342_v20 = vld [vmem:[%s714_s4 + $0x90] sm:$0xff] }
  0x1b   :  { %162 = vmatpush.msra.mxu3 %v76_v25  ;;  %v341_v21 = vld [vmem:[%s714_s4 + $0x88] sm:$0xff]  ;;  %v340_v22 = vld [vmem:[%s714_s4 + $0x80] sm:$0xff]  ;;  %v290_v23 = vld [vmem:[%s717_s7 + $0x78] sm:$0xff] }
  0x1c   :  { %138 = vmatpush.msra.mxu2 %v121_v37  ;;  %250 = vmatpush.msrb.mxu0 %v337_v50  ;;  %v289_v24 = vld [vmem:[%s717_s7 + $0x70] sm:$0xff]  ;;  %v288_v25 = vld [vmem:[%s717_s7 + $0x68] sm:$0xff]  ;;  %v283_v30 = vld [vmem:[%s717_s7 + $0x40] sm:$0xff] }
  0x1d   :  { %163 = vmatpush.msra.mxu3 %v75_v26  ;;  %v287_v26 = vld [vmem:[%s717_s7 + $0x60] sm:$0xff]  ;;  %v284_v29 = vld [vmem:[%s717_s7 + $0x48] sm:$0xff]  ;;  %v282_v31 = vld [vmem:[%s717_s7 + $0x38] sm:$0xff] }
  0x1e   :  { %139 = vmatpush.msra.mxu2 %v120_v38  ;;  %251 = vmatpush.msrb.mxu0 %v336_v51  ;;  %v281_v32 = vld [vmem:[%s717_s7 + $0x30] sm:$0xff]  ;;  %v280_v33 = vld [vmem:[%s717_s7 + $0x28] sm:$0xff]  ;;  %v279_v34 = vld [vmem:[%s717_s7 + $0x20] sm:$0xff] }
  0x1f   :  { %164 = vmatpush.msra.mxu3 %v74_v27  ;;  %v286_v27 = vld [vmem:[%s717_s7 + $0x58] sm:$0xff]  ;;  %v277_v37 = vld [vmem:[%s717_s7 + $0x10] sm:$0xff]  ;;  %v276_v38 = vld [vmem:[%s717_s7 + $0x8] sm:$0xff] }
  0x20   :  { %140 = vmatpush.msra.mxu2 %v119_v39  ;;  %252 = vmatpush.msrb.mxu0 %v335_v52  ;;  %v278_v35 = vld [vmem:[%s717_s7 + $0x18] sm:$0xff]  ;;  %v275_v39 = vld [vmem:[%s717_s7] sm:$0xff] }
  0x21   :  { %165 = vmatpush.msra.mxu3 %v73_v28  ;;  %v285_v28 = vld [vmem:[%s717_s7 + $0x50] sm:$0xff] }
  0x22   :  { %141 = vmatpush.msra.mxu2 %v118_v40  ;;  %253 = vmatpush.msrb.mxu0 %v334_v53  ;;  %v359_v40 = vld [vmem:[%s716_s6 + $0x1] ss:$0 sm:$0xff] }
  0x24   :  { %142 = vmatpush.msra.mxu2 %v117_v41  ;;  %254 = vmatpush.msrb.mxu0 %v333_v54 }
  0x26   :  { %143 = vmatpush.msra.mxu2 %v116_v42  ;;  %255 = vmatpush.msrb.mxu0 %v332_v55 }
  0x28   :  { %144 = vmatpush.msra.mxu2 %v115_v44  ;;  %256 = vmatpush.msrb.mxu0 %v331_v56 }
  0x2a   :  { %145 = vmatpush.msra.mxu2 %v114_v48  ;;  %257 = vmatpush.msrb.mxu0 %v330_v57 }
  0x2c   :  { %258 = vmatpush.msrb.mxu0 %v329_v58  ;;  %295 = vmatpush.msrb.mxu2 %v290_v23 }
  0x2e   :  { %259 = vmatpush.msrb.mxu0 %v328_v59  ;;  %296 = vmatpush.msrb.mxu2 %v289_v24 }
  0x30   :  { %260 = vmatpush.msrb.mxu0 %v327_v60  ;;  %297 = vmatpush.msrb.mxu2 %v288_v25 }
  0x32   :  { %261 = vmatpush.msrb.mxu0 %v326_v61  ;;  %298 = vmatpush.msrb.mxu2 %v287_v26 }
  0x34   :  { %262 = vmatpush.msrb.mxu0 %v325_v63  ;;  %299 = vmatpush.msrb.mxu2 %v286_v27 }
  0x36   :  { %263 = vmatpush.msrb.mxu0 %v324_v0  ;;  %300 = vmatpush.msrb.mxu2 %v285_v28 }
  0x38   :  { %264 = vmatpush.msrb.mxu0 %v323_v1  ;;  %301 = vmatpush.msrb.mxu2 %v284_v29 }
  0x3a   :  { %302 = vmatpush.msrb.mxu2 %v283_v30 }
  0x3c   :  { %303 = vmatpush.msrb.mxu2 %v282_v31 }
  0x3e   :  { %304 = vmatpush.msrb.mxu2 %v281_v32 }
  0x40   :  { %305 = vmatpush.msrb.mxu2 %v280_v33 }
  0x42   :  { %306 = vmatpush.msrb.mxu2 %v279_v34 }
  0x44   :  { %307 = vmatpush.msrb.mxu2 %v278_v35 }
  0x46   :  { %308 = vmatpush.msrb.mxu2 %v277_v37 }
  0x48   :  { %309 = vmatpush.msrb.mxu2 %v276_v38 }
  0x4a   :  { %310 = vmatpush.msrb.mxu2 %v275_v39 }
  0x96   :  { %v70_v45 = vpop.f32.mrf.mxu0 }
  0x97   :  { %v71_v46 = vadd.f32 %v357_v43, %v70_v45  ;;  %v360_v45 = vld [vmem:[%s718_s8] ss:$0 sm:$0xff] }
  0x99   :  { %109 = vmatpush.msra.mxu1 %v71_v46  ;;  %166 = vmatmul.f32.vlgmr.msra.gmra.mxu3 %v71_v46 }
  0x9a   :  { %322 = vmatmul.msk.f32.vlgmr.msra.gmra.mxu1 %vm90_vm1, %v89_v47 }
 0x117   :  { %v111_v62 = vpop.f32.mrf.mxu1 }
 0x118   :  { %146 = vmatmul.f32.vlgmr.msra.gmra.mxu2 %v111_v62 }
 0x11c   :  { %v167_v3 = vpop.f32.mrf.mxu3 }
 0x19b   :  { %v147_v4 = vpop.f32.mrf.mxu2 }
 0x19c   :  { %v168_v5 = vadd.f32 %v167_v3, %v147_v4 }
 0x19e   :  { %v174_v6 = vadd.f32 %v358_v2, %v168_v5 }
 0x1a0   :  { %207 = vmatpush.msrb.mxu1 %v174_v6  ;;  %265 = vmatmul.f32.vlgmr.msrb.gmra.mxu0 %v174_v6 }
 0x1a1   :  { %339 = vmatmul.msk.f32.vlgmr.msrb.gmra.mxu1 %vm90_vm1, %v89_v47 }
 0x1a2   :  { %229 = vmatpush.msra.mxu1 %v355_v7 }
 0x1a4   :  { %230 = vmatpush.msra.mxu1 %v354_v8 }
 0x1a6   :  { %231 = vmatpush.msra.mxu1 %v353_v9 }
 0x1a8   :  { %232 = vmatpush.msra.mxu1 %v352_v10 }
 0x1aa   :  { %233 = vmatpush.msra.mxu1 %v351_v11 }
 0x1ac   :  { %234 = vmatpush.msra.mxu1 %v350_v12 }
 0x1ae   :  { %235 = vmatpush.msra.mxu1 %v349_v13 }
 0x1b0   :  { %236 = vmatpush.msra.mxu1 %v348_v14 }
 0x1b2   :  { %237 = vmatpush.msra.mxu1 %v347_v15 }
 0x1b4   :  { %238 = vmatpush.msra.mxu1 %v346_v16 }
 0x1b6   :  { %239 = vmatpush.msra.mxu1 %v345_v17 }
 0x1b8   :  { %240 = vmatpush.msra.mxu1 %v344_v18 }
 0x1ba   :  { %241 = vmatpush.msra.mxu1 %v343_v19 }
 0x1bc   :  { %242 = vmatpush.msra.mxu1 %v342_v20 }
 0x1be   :  { %243 = vmatpush.msra.mxu1 %v341_v21 }
 0x1c0   :  { %244 = vmatpush.msra.mxu1 %v340_v22 }
 0x21d   :  { %v266_v41 = vpop.f32.mrf.mxu0 }
 0x21e   :  { %v209_v36 = vpop.f32.mrf.mxu1 }
 0x21f   :  { %245 = vmatmul.f32.vlgmr.msra.gmra.mxu1 %v209_v36 }
 0x29c   :  { %v246_v42 = vpop.f32.mrf.mxu1 }
 0x29d   :  { %v267_v43 = vadd.f32 %v266_v41, %v246_v42 }
 0x29f   :  { %v274_v44 = vadd.f32 %v359_v40, %v267_v43 }
 0x2a1   :  { %311 = vmatmul.f32.vlgmr.msrb.gmra.mxu2 %v274_v44 }
 0x324   :  { %v312_v46 = vpop.f32.mrf.mxu2 }
 0x325   :  { %v313_v47 = vadd.f32 %v360_v45, %v312_v46 }
 0x327   :  { %316 = vst.msk [vmem:[%s719_s9] sm:$0xff] %vm315_vm2, %v313_v47 }

</bundles_post_ra>
